<compile_context>
chip_gen: v7x
topology: tpu7x:2x2x1
jax: 0.10.0
libtpu: 0.0.40
codegen_flags: <defaults>
</compile_context>

<pallas_src>
import jax
import jax.numpy as jnp
import numpy as np
from jax.experimental import pallas as pl
from jax.experimental.pallas import tpu as pltpu

# ---- model hyper-parameters (small, consistent with the module) -------------
NUM_USERS = 16
NUM_ITEMS = 48
N_NODES = NUM_USERS + NUM_ITEMS          # 64
LATENT_DIM = 32                          # latent_dim_rec
N_LAYERS = 3                             # computer() concatenates embs[0..3]
BATCH = 8
OUT_LANES = 128                          # lane-dense output width
W_PAD = 4 * LATENT_DIM                   # 128: uniform lane-padded MLP width

_LRELU_MLP = 0.4                         # LeakyReLU slope inside net_1


def _leaky_relu(x, slope):
    return jnp.where(x > 0, x, slope * x)


def _vmem_spec():
    return pl.BlockSpec(memory_space=pltpu.MemorySpace.VMEM)


# ---------------------------------------------------------------------------
# Fused kernel: propagation + net_1 MLP + in-kernel gather + dot-product score
# ---------------------------------------------------------------------------
def lightgcn_fused_kernel(g_ref, e0_ref, w_ref, b_ref, idx_ref, out_ref):
    # ---- LightGCN propagation: e_{k+1} = G @ e_k ----------------------------
    g = g_ref[...]                                               # (N, N)
    e0 = e0_ref[...]                                             # (N, D)
    e1 = jnp.dot(g, e0, preferred_element_type=jnp.float32)
    e2 = jnp.dot(g, e1, preferred_element_type=jnp.float32)
    e3 = jnp.dot(g, e2, preferred_element_type=jnp.float32)

    # ---- X = concat([e0..e3], -1): one lane-concat (XLU), then one K=128 dot.
    x = jnp.concatenate([e0, e1, e2, e3], axis=-1)               # (N, 128)

    # ---- net_1: four (64,128)x(128,128) matmuls on lane-padded weights ------
    # Padded rows/cols of W and padded cols of b are zero, so the padded
    # columns of h stay exactly 0 through LeakyReLU (leaky_relu(0) == 0).
    b_all = b_ref[...]                                           # (4, 128)
    h = x
    for k in range(4):
        w_k = w_ref[k * W_PAD:(k + 1) * W_PAD, :]                # (128, 128)
        b_k = b_all[k:k + 1, :]                                  # (1, 128)
        h = _leaky_relu(
            jnp.dot(h, w_k, preferred_element_type=jnp.float32) + b_k,
            _LRELU_MLP)                                          # (N, 128)

    # ---- merged in-kernel gather: one (2B, N) one-hot selection matmul ------
    idx = idx_ref[...]                                           # (2B, 1) int32
    col = jax.lax.broadcasted_iota(jnp.int32, (2 * BATCH, N_NODES), 1)
    onehot = (col == idx).astype(jnp.float32)                    # (2B, N)
    ui = jnp.dot(onehot, h, preferred_element_type=jnp.float32)  # (2B, 128)
    users_emb = ui[:BATCH, :]                                    # (B, 128)
    items_emb = ui[BATCH:, :]                                    # (B, 128)

    # ---- score: gamma = sum(users_emb * items_emb, -1); padded cols are 0 ---
    gamma = jnp.sum(users_emb * items_emb, axis=-1, keepdims=True)  # (B, 1)
    out_ref[...] = jnp.broadcast_to(gamma, out_ref.shape)           # (B, 128)


# ---------------------------------------------------------------------------
# Wrapper: pack parameters once, then a single pallas_call per forward
# ---------------------------------------------------------------------------
def pack_params(params):
    """Pack the 11 parameter tensors into 3 lane/sublane-aligned buffers."""
    def pad_w(w):
        r, c = w.shape
        return jnp.pad(w, ((0, W_PAD - r), (0, W_PAD - c)))

    def pad_b(b):
        return jnp.pad(b, ((0, 0), (0, W_PAD - b.shape[1])))

    emb_all = jnp.concatenate([params["emb_user"], params["emb_item"]], axis=0)
    w_packed = jnp.concatenate(
        [pad_w(params["w1"]), pad_w(params["w2"]),
         pad_w(params["w3"]), pad_w(params["w4"])], axis=0)       # (512, 128)
    b_packed = jnp.concatenate(
        [pad_b(params["b1"]), pad_b(params["b2"]),
         pad_b(params["b3"]), pad_b(params["b4"])], axis=0)       # (4, 128)
    return emb_all, w_packed, b_packed


def lightgcn_forward(packed, graph, users, items):
    emb_all, w_packed, b_packed = packed
    # Stack indices: rows 0..B-1 = user row ids, rows B..2B-1 = item row ids
    # (item offset +NUM_USERS applied here, in the wrapper).
    idx = jnp.concatenate(
        [users.astype(jnp.int32), items.astype(jnp.int32) + NUM_USERS]
    ).reshape(2 * BATCH, 1)

    out = pl.pallas_call(
        lightgcn_fused_kernel,
        out_shape=jax.ShapeDtypeStruct((BATCH, OUT_LANES), jnp.float32),
        in_specs=[_vmem_spec()] * 5,
        out_specs=_vmem_spec(),
    )(graph, emb_all, w_packed, b_packed, idx)
    return out[:, 0]                                             # (B,)


# ---------------------------------------------------------------------------
# Deterministic parameter / input construction
# ---------------------------------------------------------------------------
def xavier_uniform(key, shape, gain=1.0):
    fan_in, fan_out = shape
    a = gain * np.sqrt(6.0 / (fan_in + fan_out))
    return jax.random.uniform(key, shape, jnp.float32, -a, a)


def make_params(key):
    d = LATENT_DIM
    ks = jax.random.split(key, 10)
    return {
        "emb_user": xavier_uniform(ks[0], (NUM_USERS, d)),
        "emb_item": xavier_uniform(ks[1], (NUM_ITEMS, d)),
        "w1": xavier_uniform(ks[2], (4 * d, 4 * d)),
        "b1": jax.random.uniform(ks[3], (1, 4 * d), jnp.float32, -0.05, 0.05),
        "w2": xavier_uniform(ks[4], (4 * d, 3 * d)),
        "b2": jax.random.uniform(ks[5], (1, 3 * d), jnp.float32, -0.05, 0.05),
        "w3": xavier_uniform(ks[6], (3 * d, 2 * d)),
        "b3": jax.random.uniform(ks[7], (1, 2 * d), jnp.float32, -0.05, 0.05),
        "w4": xavier_uniform(ks[8], (2 * d, d)),
        "b4": jax.random.uniform(ks[9], (1, d), jnp.float32, -0.05, 0.05),
    }


def make_graph(key):
    # Synthetic symmetric-normalized adjacency D^{-1/2} A D^{-1/2}, bipartite
    # user-item edges as in LightGCN's getSparseGraph(), stored densely.
    r = jax.random.uniform(key, (NUM_USERS, NUM_ITEMS))
    ui = (r < 0.2).astype(jnp.float32)
    a = jnp.zeros((N_NODES, N_NODES), jnp.float32)
    a = a.at[:NUM_USERS, NUM_USERS:].set(ui)
    a = a.at[NUM_USERS:, :NUM_USERS].set(ui.T)
    deg = a.sum(axis=1)
    dinv = jnp.where(deg > 0, 1.0 / jnp.sqrt(deg), 0.0)
    return dinv[:, None] * a * dinv[None, :]


def reference_forward(params, graph, users, items):
    all_emb = jnp.concatenate([params["emb_user"], params["emb_item"]], axis=0)
    embs = [all_emb]
    e = all_emb
    for _ in range(N_LAYERS):
        e = graph @ e
        embs.append(e)
    x = jnp.concatenate(embs[:4], axis=-1)
    h = x
    for wi, bi in (("w1", "b1"), ("w2", "b2"), ("w3", "b3"), ("w4", "b4")):
        h = _leaky_relu(h @ params[wi] + params[bi], _LRELU_MLP)
    all_users, all_items = h[:NUM_USERS], h[NUM_USERS:]
    return jnp.sum(all_users[users] * all_items[items], axis=1)


if __name__ == "__main__":
    key = jax.random.PRNGKey(0)
    k_params, k_graph, k_u, k_i = jax.random.split(key, 4)

    params = make_params(k_params)
    graph = make_graph(k_graph)
    users = jax.random.randint(k_u, (BATCH,), 0, NUM_USERS)
    items = jax.random.randint(k_i, (BATCH,), 0, NUM_ITEMS)

    packed = pack_params(params)
    gamma = jax.block_until_ready(lightgcn_forward(packed, graph, users, items))
    ref = jax.block_until_ready(reference_forward(params, graph, users, items))

    assert gamma.shape == (BATCH,)
    # Tolerance accounts for TPU default (bf16 multi-pass) matmul precision,
    # which may differ slightly between the XLA reference and Mosaic lowering;
    # semantic errors (wrong gather / layer order) would be O(0.1-1).
    np.testing.assert_allclose(np.asarray(gamma), np.asarray(ref),
                               rtol=1e-2, atol=1e-3)
    print("KERNEL_OK")
</pallas_src>

<mosaic_0001>
module attributes {stable_mosaic.version = 11 : i64} {
  func.func @lightgcn_fused_kernel(%arg0: memref<64x64xf32, #tpu.memory_space<vmem>>, %arg1: memref<64x32xf32, #tpu.memory_space<vmem>>, %arg2: memref<512x128xf32, #tpu.memory_space<vmem>>, %arg3: memref<4x128xf32, #tpu.memory_space<vmem>>, %arg4: memref<16x1xi32, #tpu.memory_space<vmem>>, %arg5: memref<8x128xf32, #tpu.memory_space<vmem>>) attributes {dimension_semantics = [], scalar_prefetch = 0 : i64, scratch_operands = 0 : i64, tpu.core_type = #tpu.core_type<tc>} {
    %c0 = arith.constant 0 : index
    %c0_0 = arith.constant 0 : index
    %0 = vector.load %arg0[%c0, %c0_0] : memref<64x64xf32, #tpu.memory_space<vmem>>, vector<64x64xf32>
    %c0_1 = arith.constant 0 : index
    %c0_2 = arith.constant 0 : index
    %1 = vector.load %arg1[%c0_1, %c0_2] : memref<64x32xf32, #tpu.memory_space<vmem>>, vector<64x32xf32>
    %cst = arith.constant dense<0.000000e+00> : vector<64x32xf32>
    %2 = tpu.matmul %0, %1, %cst {dimension_numbers = #tpu.dot_dimension_numbers<[1], [0], [0], [1], [0, 0, 1, 1], [], []>} : vector<64x64xf32>, vector<64x32xf32>, vector<64x32xf32> -> vector<64x32xf32>
    %cst_3 = arith.constant dense<0.000000e+00> : vector<64x32xf32>
    %3 = tpu.matmul %0, %2, %cst_3 {dimension_numbers = #tpu.dot_dimension_numbers<[1], [0], [0], [1], [0, 0, 1, 1], [], []>} : vector<64x64xf32>, vector<64x32xf32>, vector<64x32xf32> -> vector<64x32xf32>
    %cst_4 = arith.constant dense<0.000000e+00> : vector<64x32xf32>
    %4 = tpu.matmul %0, %3, %cst_4 {dimension_numbers = #tpu.dot_dimension_numbers<[1], [0], [0], [1], [0, 0, 1, 1], [], []>} : vector<64x64xf32>, vector<64x32xf32>, vector<64x32xf32> -> vector<64x32xf32>
    %5 = tpu.concatenate %1, %2, %3, %4 in 1 : vector<64x32xf32>, vector<64x32xf32>, vector<64x32xf32>, vector<64x32xf32> -> vector<64x128xf32>
    %c0_5 = arith.constant 0 : index
    %c0_6 = arith.constant 0 : index
    %6 = vector.load %arg3[%c0_5, %c0_6] : memref<4x128xf32, #tpu.memory_space<vmem>>, vector<4x128xf32>
    %c0_7 = arith.constant 0 : index
    %c0_8 = arith.constant 0 : index
    %7 = vector.load %arg2[%c0_7, %c0_8] : memref<512x128xf32, #tpu.memory_space<vmem>>, vector<128x128xf32>
    %8 = vector.extract_strided_slice %6 {offsets = [0, 0], sizes = [1, 128], strides = [1, 1]} : vector<4x128xf32> to vector<1x128xf32>
    %cst_9 = arith.constant dense<0.000000e+00> : vector<64x128xf32>
    %9 = tpu.matmul %5, %7, %cst_9 {dimension_numbers = #tpu.dot_dimension_numbers<[1], [0], [0], [1], [0, 0, 1, 1], [], []>} : vector<64x128xf32>, vector<128x128xf32>, vector<64x128xf32> -> vector<64x128xf32>
    %10 = vector.broadcast %8 : vector<1x128xf32> to vector<64x128xf32>
    %11 = arith.addf %9, %10 : vector<64x128xf32>
    %cst_10 = arith.constant 0.000000e+00 : f32
    %12 = vector.broadcast %cst_10 : f32 to vector<64x128xf32>
    %13 = arith.cmpf ogt, %11, %12 : vector<64x128xf32>
    %cst_11 = arith.constant 4.000000e-01 : f32
    %14 = vector.broadcast %cst_11 : f32 to vector<64x128xf32>
    %15 = arith.mulf %14, %11 : vector<64x128xf32>
    %16 = arith.select %13, %11, %15 : vector<64x128xi1>, vector<64x128xf32>
    %c128 = arith.constant 128 : index
    %c0_12 = arith.constant 0 : index
    %17 = vector.load %arg2[%c128, %c0_12] : memref<512x128xf32, #tpu.memory_space<vmem>>, vector<128x128xf32>
    %18 = vector.extract_strided_slice %6 {offsets = [1, 0], sizes = [1, 128], strides = [1, 1]} : vector<4x128xf32> to vector<1x128xf32>
    %cst_13 = arith.constant dense<0.000000e+00> : vector<64x128xf32>
    %19 = tpu.matmul %16, %17, %cst_13 {dimension_numbers = #tpu.dot_dimension_numbers<[1], [0], [0], [1], [0, 0, 1, 1], [], []>} : vector<64x128xf32>, vector<128x128xf32>, vector<64x128xf32> -> vector<64x128xf32>
    %20 = vector.broadcast %18 : vector<1x128xf32> to vector<64x128xf32>
    %21 = arith.addf %19, %20 : vector<64x128xf32>
    %cst_14 = arith.constant 0.000000e+00 : f32
    %22 = vector.broadcast %cst_14 : f32 to vector<64x128xf32>
    %23 = arith.cmpf ogt, %21, %22 : vector<64x128xf32>
    %cst_15 = arith.constant 4.000000e-01 : f32
    %24 = vector.broadcast %cst_15 : f32 to vector<64x128xf32>
    %25 = arith.mulf %24, %21 : vector<64x128xf32>
    %26 = arith.select %23, %21, %25 : vector<64x128xi1>, vector<64x128xf32>
    %c256 = arith.constant 256 : index
    %c0_16 = arith.constant 0 : index
    %27 = vector.load %arg2[%c256, %c0_16] : memref<512x128xf32, #tpu.memory_space<vmem>>, vector<128x128xf32>
    %28 = vector.extract_strided_slice %6 {offsets = [2, 0], sizes = [1, 128], strides = [1, 1]} : vector<4x128xf32> to vector<1x128xf32>
    %cst_17 = arith.constant dense<0.000000e+00> : vector<64x128xf32>
    %29 = tpu.matmul %26, %27, %cst_17 {dimension_numbers = #tpu.dot_dimension_numbers<[1], [0], [0], [1], [0, 0, 1, 1], [], []>} : vector<64x128xf32>, vector<128x128xf32>, vector<64x128xf32> -> vector<64x128xf32>
    %30 = vector.broadcast %28 : vector<1x128xf32> to vector<64x128xf32>
    %31 = arith.addf %29, %30 : vector<64x128xf32>
    %cst_18 = arith.constant 0.000000e+00 : f32
    %32 = vector.broadcast %cst_18 : f32 to vector<64x128xf32>
    %33 = arith.cmpf ogt, %31, %32 : vector<64x128xf32>
    %cst_19 = arith.constant 4.000000e-01 : f32
    %34 = vector.broadcast %cst_19 : f32 to vector<64x128xf32>
    %35 = arith.mulf %34, %31 : vector<64x128xf32>
    %36 = arith.select %33, %31, %35 : vector<64x128xi1>, vector<64x128xf32>
    %c384 = arith.constant 384 : index
    %c0_20 = arith.constant 0 : index
    %37 = vector.load %arg2[%c384, %c0_20] : memref<512x128xf32, #tpu.memory_space<vmem>>, vector<128x128xf32>
    %38 = vector.extract_strided_slice %6 {offsets = [3, 0], sizes = [1, 128], strides = [1, 1]} : vector<4x128xf32> to vector<1x128xf32>
    %cst_21 = arith.constant dense<0.000000e+00> : vector<64x128xf32>
    %39 = tpu.matmul %36, %37, %cst_21 {dimension_numbers = #tpu.dot_dimension_numbers<[1], [0], [0], [1], [0, 0, 1, 1], [], []>} : vector<64x128xf32>, vector<128x128xf32>, vector<64x128xf32> -> vector<64x128xf32>
    %40 = vector.broadcast %38 : vector<1x128xf32> to vector<64x128xf32>
    %41 = arith.addf %39, %40 : vector<64x128xf32>
    %cst_22 = arith.constant 0.000000e+00 : f32
    %42 = vector.broadcast %cst_22 : f32 to vector<64x128xf32>
    %43 = arith.cmpf ogt, %41, %42 : vector<64x128xf32>
    %cst_23 = arith.constant 4.000000e-01 : f32
    %44 = vector.broadcast %cst_23 : f32 to vector<64x128xf32>
    %45 = arith.mulf %44, %41 : vector<64x128xf32>
    %46 = arith.select %43, %41, %45 : vector<64x128xi1>, vector<64x128xf32>
    %c0_24 = arith.constant 0 : index
    %c0_25 = arith.constant 0 : index
    %47 = vector.load %arg4[%c0_24, %c0_25] : memref<16x1xi32, #tpu.memory_space<vmem>>, vector<16x1xi32>
    %48 = tpu.iota {dimensions = array<i32: 1>} : vector<16x64xi32>
    %49 = vector.broadcast %47 : vector<16x1xi32> to vector<16x64xi32>
    %50 = arith.cmpi eq, %48, %49 : vector<16x64xi32>
    %51 = arith.extui %50 : vector<16x64xi1> to vector<16x64xi32>
    %52 = arith.sitofp %51 : vector<16x64xi32> to vector<16x64xf32>
    %cst_26 = arith.constant dense<0.000000e+00> : vector<16x128xf32>
    %53 = tpu.matmul %52, %46, %cst_26 {dimension_numbers = #tpu.dot_dimension_numbers<[1], [0], [0], [1], [0, 0, 1, 1], [], []>} : vector<16x64xf32>, vector<64x128xf32>, vector<16x128xf32> -> vector<16x128xf32>
    %54 = vector.extract_strided_slice %53 {offsets = [0, 0], sizes = [8, 128], strides = [1, 1]} : vector<16x128xf32> to vector<8x128xf32>
    %55 = vector.extract_strided_slice %53 {offsets = [8, 0], sizes = [8, 128], strides = [1, 1]} : vector<16x128xf32> to vector<8x128xf32>
    %56 = arith.mulf %54, %55 : vector<8x128xf32>
    %cst_27 = arith.constant dense<0.000000e+00> : vector<8xf32>
    %57 = vector.multi_reduction <add>, %56, %cst_27 [1] : vector<8x128xf32> to vector<8xf32>
    %58 = vector.shape_cast %57 : vector<8xf32> to vector<8x1xf32>
    %59 = vector.shape_cast %58 : vector<8x1xf32> to vector<8x1xf32>
    %60 = vector.broadcast %59 : vector<8x1xf32> to vector<8x128xf32>
    %c0_28 = arith.constant 0 : index
    %c0_29 = arith.constant 0 : index
    %61 = vector.load %arg5[%c0_28, %c0_29] : memref<8x128xf32, #tpu.memory_space<vmem>>, vector<8x128xf32>
    tpu.vector_store %arg5[%c0_28, %c0_29], %60 {strides = array<i32>} : memref<8x128xf32, #tpu.memory_space<vmem>>, vector<8x128xf32>,
    return
  }
}

</mosaic_0001>

<bundles_post_ra>
// kernel: tpu_custom_call.1
= control target key start
LH: loop header
LB: loop body
LE: loop exit
PB: predicated region body
PF: predicated region fallthrough
CT: control target
= control target key end

     0   :  { %10 = vsyncpa [#allocation3], 0  ;;  %s2279_s0 = inlined_call_operand.vmem [shape: f32[64,64], index: 0, kind: input, shape index: {}]   ;;  %s2280_s1 = inlined_call_operand.vmem [shape: f32[64,32], index: 1, kind: input, shape index: {}]   ;;  %s2281_s2 = inlined_call_operand.hbm [shape: f32[512,128], index: 2, kind: input, shape index: {}]   ;;  %s2282_s3 = inlined_call_operand.vmem [shape: f32[4,128], index: 3, kind: input, shape index: {}]   ;;  %s2283_s4 = inlined_call_operand.vmem [shape: s32[16,1], index: 4, kind: input, shape index: {}]   ;;  %s2284_s5 = inlined_call_operand.hbm [shape: f32[8,128], index: 5, kind: output, shape index: {}]  }
   0x1   :  { %11 = vsyncpa [#allocation4], 0  ;;  %s1998_s18 = smov [#allocation2]   ;;  %s1950_s22 = scalar_lea.hbm %s2281_s2, 8192 }
   0x2   :  { %s21_s19 = sshll.u32 %s1998_s18, 4  ;;  %p1951_p0 = scmp.ne.s32.totalorder %s2281_s2, %s1950_s22  ;;  %s22_s19 = int_to_ptr.vmem [resolvable:$true] %s21_s19 }
   0x3   :  { %p1954_p1 = scmp.lt.u32.totalorder %s1950_s22, %s2281_s2 }
   0x5   :  { %p1956_p2 = pnand %p1954_p1, %p1951_p0 }
   0x7   :  { %1959 = shalt.err (!%p1956_p2)
}
   0x8   :  { %s1960_s27 = scalar_lea.vmem %s22_s19, 8192  ;;  %p1965_p4 = scmp.lt.s32.totalorder %s22_s19, %s22_s19 }
   0x9   :  { %p1961_p3 = scmp.ne.s32.totalorder %s22_s19, %s1960_s27  ;;  %p1966_p5 = scmp.lt.s32.totalorder %s1960_s27, %s1960_s27 }
   0xb   :  { %p1967_p6 = por %p1966_p5, %p1965_p4 }
   0xd   :  { %p1968_p7 = pnand %p1967_p6, %p1961_p3 }
   0xf   :  { %1971 = shalt.err (!%p1968_p7)
}
  0x10   :  { %s1999_s28 = smov 128   ;;  %s2000_s29 = smov 8  }
  0x11   :  { %27 = dma.hbm_to_vmem [thread:$0]  %s2281_s2, 8192, %s22_s19, [#allocation3], %s1999_s28, %s1999_s28, %s2000_s29  }
  0x12   :  { %1994 = dma.done.wait [#allocation3], 8192  }
  0x13   :  { %1995 = vsyncadd [#allocation3], 4294959104  ;;  %v2052_v0 = vld [vmem:[%s2280_s1] sm:$0xff]  ;;  %v2057_v1 = vld [vmem:[%s2280_s1 + $0x8] sm:$0xff]  ;;  %vm51_vm0 = vcmask 523264   ;;  %s2001_s12 = smov 32  }
  0x14   :  { %v2062_v2 = vld [vmem:[%s2280_s1 + $0x10] sm:$0xff]  ;;  %v1687_v3 = vpack.c.bf16 %v2057_v1, %v2052_v0  ;;  %v2069_v4 = vld [vmem:[%s2280_s1 + $0x18] sm:$0xff]  ;;  %v2076_v6 = vld [vmem:[%s2280_s1 + $0x20] sm:$0xff]  ;;  %s2003_s2 = smov 96   ;;  %vm487_vm1 = vcmask 261120   ;;  %vm504_vm2 = vcmask 785408  }
  0x15   :  { %v1691_v5 = vpack.c.bf16 %v2069_v4, %v2062_v2  ;;  %v2081_v7 = vld [vmem:[%s2280_s1 + $0x28] sm:$0xff]  ;;  %v35_v8 = vld [vmem:[%s2279_s0] sm:$0xff]  ;;  %v2093_v10 = vld [vmem:[%s2280_s1 + $0x30] sm:$0xff] }
  0x16   :  { %1688 = vmatprep.subr.bf16.mxu0 %v1687_v3  ;;  %1424 = vmatprep.mubr.msk.f32.mxu0 %vm51_vm0, %v35_v8  ;;  %v1695_v9 = vpack.c.bf16 %v2081_v7, %v2076_v6  ;;  %v2098_v11 = vld [vmem:[%s2280_s1 + $0x38] sm:$0xff]  ;;  %v2105_v13 = vld [vmem:[%s2279_s0 + $0x8] sm:$0xff]  ;;  %v2110_v14 = vld [vmem:[%s2279_s0 + $0x10] sm:$0xff] }
  0x17   :  { %1690 = vmatpush3.bf16.msra.mxu0 %v1687_v3  ;;  %1452 = vmatprep.mubr.msk.f32.mxu1 %vm51_vm0, %v35_v8  ;;  %v1699_v12 = vpack.c.bf16 %v2098_v11, %v2093_v10  ;;  %v2119_v15 = vld [vmem:[%s2279_s0 + $0x18] sm:$0xff]  ;;  %v2124_v16 = vld [vmem:[%s2279_s0 + $0x20] sm:$0xff]  ;;  %v2133_v17 = vld [vmem:[%s2279_s0 + $0x28] sm:$0xff] }
  0x18   :  { %1692 = vmatprep.subr.bf16.mxu0 %v1691_v5  ;;  %v2138_v18 = vld [vmem:[%s2279_s0 + $0x30] sm:$0xff]  ;;  %v2147_v19 = vld [vmem:[%s2279_s0 + $0x38] sm:$0xff]  ;;  %s2002_s0 = smov 64   ;;  %v514_v52 = vld [vmem:[#allocation2] sm:$0xff] }
  0x19   :  { %v515_v53 = vld [vmem:[#allocation2 + $0x8] sm:$0xff]  ;;  %v516_v54 = vld [vmem:[#allocation2 + $0x10] sm:$0xff]  ;;  %v517_v56 = vld [vmem:[#allocation2 + $0x18] sm:$0xff] }
  0x1a   :  { %v1735_v55 = vpack.c.bf16 %v515_v53, %v514_v52  ;;  %v1739_v57 = vpack.c.bf16 %v517_v56, %v516_v54  ;;  %v518_v58 = vld [vmem:[#allocation2 + $0x20] sm:$0xff]  ;;  %v519_v59 = vld [vmem:[#allocation2 + $0x28] sm:$0xff]  ;;  %v520_v61 = vld [vmem:[#allocation2 + $0x30] sm:$0xff] }
  0x1b   :  { %1694 = vmatpush3.bf16.msra.mxu0 %v1691_v5  ;;  %v1743_v60 = vpack.c.bf16 %v519_v59, %v518_v58  ;;  %v521_v62 = vld [vmem:[#allocation2 + $0x38] sm:$0xff]  ;;  %v522_v3 = vld [vmem:[#allocation2 + $0x40] sm:$0xff]  ;;  %v523_v5 = vld [vmem:[#allocation2 + $0x48] sm:$0xff] }
  0x1c   :  { %1696 = vmatprep.subr.bf16.mxu0 %v1695_v9  ;;  %v1747_v63 = vpack.c.bf16 %v521_v62, %v520_v61 }
  0x1f   :  { %1698 = vmatpush3.bf16.msra.mxu0 %v1695_v9  ;;  %v524_v9 = vld [vmem:[#allocation2 + $0x50] sm:$0xff] }
  0x20   :  { %1700 = vmatprep.subr.bf16.mxu0 %v1699_v12 }
  0x23   :  { %1702 = vmatpush3.bf16.msra.mxu0 %v1699_v12  ;;  %v525_v12 = vld [vmem:[#allocation2 + $0x58] sm:$0xff] }
  0x26   :  { %1425 = vmatmul.mubr.msk.f32.vlgmr.msra.gmra.mrb[0].mxu0 %vm51_vm0, %v2105_v13 }
  0x27   :  { %1427 = vmatprep.mubr.msk.f32.mxu0 %vm51_vm0, %v2110_v14 }
  0x2a   :  { %1428 = vmatmul.mubr.msk.f32.gmra.mrb[2].mxu0 %vm51_vm0, %v2119_v15 }
  0x2b   :  { %1430 = vmatprep.mubr.msk.f32.mxu0 %vm51_vm0, %v2124_v16 }
  0x2e   :  { %1431 = vmatmul.mubr.msk.f32.gmra.mrb[4].mxu0 %vm51_vm0, %v2133_v17 }
  0x2f   :  { %1433 = vmatprep.mubr.msk.f32.mxu0 %vm51_vm0, %v2138_v18 }
  0x32   :  { %1434 = vmatmul.mubr.msk.f32.gmra.mrb[6].mxu0 %vm51_vm0, %v2147_v19 }
  0x33   :  { %1480 = vmatprep.mubr.msk.f32.mxu0 %vm51_vm0, %v35_v8  ;;  %v1751_v8 = vpack.c.bf16 %v523_v5, %v522_v3 }
  0xf9   :  { %v1426_v20 = vpop.f32.mrb[0].mxu0 }
  0xfa   :  { %v142_v21 = vpop.f32.mrb[1].mxu0 }
  0xfb   :  { %v1888_v22 = vpack.i.bf16 %v1426_v20, %v142_v21  ;;  %v1703_v23 = vpack.c.bf16 %v1426_v20, %v142_v21 }
  0xfd   :  { %1889 = vrot.lane.b32.xlu0 %v1888_v22, %s2001_s12  ;;  %v1429_v24 = vpop.f32.mrb[2].mxu0  ;;  %1704 = vmatprep.subr.bf16.mxu1 %v1703_v23 }
  0xfe   :  { %v152_v25 = vpop.f32.mrb[3].mxu0  ;;  %1706 = vmatpush3.bf16.msra.mxu1 %v1703_v23 }
  0xff   :  { %v1707_v26 = vpack.c.bf16 %v1429_v24, %v152_v25  ;;  %v1893_v27 = vpack.i.bf16 %v1429_v24, %v152_v25 }
 0x101   :  { %1894 = vrot.lane.b32.xlu1 %v1893_v27, %s2001_s12  ;;  %v1432_v28 = vpop.f32.mrb[4].mxu0  ;;  %1708 = vmatprep.subr.bf16.mxu1 %v1707_v26  ;;  %v663_v27 = vld [vmem:[#allocation2 + $0x80] sm:$0xff] }
 0x102   :  { %v162_v29 = vpop.f32.mrb[5].mxu0  ;;  %1710 = vmatpush3.bf16.msra.mxu1 %v1707_v26 }
 0x103   :  { %v1898_v30 = vpack.i.bf16 %v1432_v28, %v162_v29  ;;  %v1711_v31 = vpack.c.bf16 %v1432_v28, %v162_v29  ;;  %v664_v28 = vld [vmem:[#allocation2 + $0x88] sm:$0xff]  ;;  %v665_v29 = vld [vmem:[#allocation2 + $0x90] sm:$0xff] }
 0x105   :  { %1899 = vrot.lane.b32.xlu0 %v1898_v30, %s2001_s12  ;;  %v2155_v32 = vpop.f32.mrb[6].mxu0  ;;  %1712 = vmatprep.subr.bf16.mxu1 %v1711_v31 }
 0x106   :  { %v2157_v33 = vpop.f32.mrb[7].mxu0  ;;  %1714 = vmatpush3.bf16.msra.mxu1 %v1711_v31  ;;  %v1767_v31 = vpack.c.bf16 %v664_v28, %v663_v27 }
 0x107   :  { %v1928_v34 = vpack.i.bf16 %v2155_v32, %v2157_v33  ;;  %v1715_v35 = vpack.c.bf16 %v2155_v32, %v2157_v33  ;;  %v671_v32 = vld [vmem:[#allocation2 + $0xc0] sm:$0xff]  ;;  %v672_v33 = vld [vmem:[#allocation2 + $0xc8] sm:$0xff] }
 0x109   :  { %1716 = vmatprep.subr.bf16.mxu1 %v1715_v35 }
 0x10a   :  { %1718 = vmatpush3.bf16.msra.mxu1 %v1715_v35  ;;  %v666_v35 = vld [vmem:[#allocation2 + $0x98] sm:$0xff] }
 0x10b   :  { %1736 = vmatprep.subr.bf16.mxu1 %v1735_v55 }
 0x10d   :  { %1453 = vmatmul.mubr.msk.f32.vlgmr.msra.gmra.mrb[0].mxu1 %vm51_vm0, %v2105_v13 }
 0x10e   :  { %1455 = vmatprep.mubr.msk.f32.mxu1 %vm51_vm0, %v2110_v14  ;;  %1738 = vmatpush3.bf16.msra.mxu1 %v1735_v55 }
 0x10f   :  { %1740 = vmatprep.subr.bf16.mxu1 %v1739_v57 }
 0x111   :  { %1456 = vmatmul.mubr.msk.f32.gmra.mrb[2].mxu1 %vm51_vm0, %v2119_v15 }
 0x112   :  { %1458 = vmatprep.mubr.msk.f32.mxu1 %vm51_vm0, %v2124_v16  ;;  %1742 = vmatpush3.bf16.msra.mxu1 %v1739_v57 }
 0x113   :  { %1744 = vmatprep.subr.bf16.mxu1 %v1743_v60 }
 0x115   :  { %1459 = vmatmul.mubr.msk.f32.gmra.mrb[4].mxu1 %vm51_vm0, %v2133_v17 }
 0x116   :  { %1461 = vmatprep.mubr.msk.f32.mxu1 %vm51_vm0, %v2138_v18  ;;  %1746 = vmatpush3.bf16.msra.mxu1 %v1743_v60 }
 0x117   :  { %1748 = vmatprep.subr.bf16.mxu1 %v1747_v63 }
 0x119   :  { %1462 = vmatmul.mubr.msk.f32.gmra.mrb[6].mxu1 %vm51_vm0, %v2147_v19 }
 0x11a   :  { %1750 = vmatpush3.bf16.msra.mxu1 %v1747_v63 }
 0x11b   :  { %1752 = vmatprep.subr.bf16.mxu1 %v1751_v8 }
 0x11e   :  { %1754 = vmatpush3.bf16.msra.mxu1 %v1751_v8 }
 0x16f   :  { %v1890_v53 = vpop.permute.xlu0 %1889 }
 0x170   :  { %v1892_v55 = vunpack.i.h.bf16 %v1890_v53  ;;  %v1891_v56 = vunpack.i.l.bf16 %v1890_v53 }
 0x172   :  { %v489_v63 = vsel %vm487_vm1, %v2057_v1, %v1892_v55  ;;  %v488_v8 = vsel %vm487_vm1, %v2052_v0, %v1891_v56  ;;  %v815_v56 = vld [vmem:[#allocation2 + $0x118] sm:$0xff] }
 0x1e0   :  { %v1454_v36 = vpop.f32.mrb[0].mxu1 }
 0x1e1   :  { %v247_v37 = vpop.f32.mrb[1].mxu1 }
 0x1e2   :  { %v1903_v38 = vpack.i.bf16 %v1454_v36, %v247_v37  ;;  %v1719_v39 = vpack.c.bf16 %v1454_v36, %v247_v37  ;;  %v1771_v37 = vpack.c.bf16 %v666_v35, %v665_v29 }
 0x1e4   :  { %1904 = vrot.lane.b32.xlu0 %v1903_v38, %s2002_s0  ;;  %v1457_v40 = vpop.f32.mrb[2].mxu1  ;;  %1720 = vmatprep.subr.bf16.mxu0 %v1719_v39  ;;  %v667_v38 = vld [vmem:[#allocation2 + $0xa0] sm:$0xff] }
 0x1e5   :  { %v257_v41 = vpop.f32.mrb[3].mxu1  ;;  %1722 = vmatpush3.bf16.msra.mxu0 %v1719_v39  ;;  %v668_v39 = vld [vmem:[#allocation2 + $0xa8] sm:$0xff] }
 0x1e6   :  { %v1908_v42 = vpack.i.bf16 %v1457_v40, %v257_v41  ;;  %v1723_v43 = vpack.c.bf16 %v1457_v40, %v257_v41 }
 0x1e8   :  { %1909 = vrot.lane.b32.xlu0 %v1908_v42, %s2002_s0  ;;  %v1460_v44 = vpop.f32.mrb[4].mxu1  ;;  %1724 = vmatprep.subr.bf16.mxu0 %v1723_v43 }
 0x1e9   :  { %v267_v45 = vpop.f32.mrb[5].mxu1  ;;  %1726 = vmatpush3.bf16.msra.mxu0 %v1723_v43  ;;  %v1775_v43 = vpack.c.bf16 %v668_v39, %v667_v38 }
 0x1ea   :  { %v1913_v46 = vpack.i.bf16 %v1460_v44, %v267_v45  ;;  %v1727_v47 = vpack.c.bf16 %v1460_v44, %v267_v45  ;;  %v669_v44 = vld [vmem:[#allocation2 + $0xb0] sm:$0xff]  ;;  %v670_v45 = vld [vmem:[#allocation2 + $0xb8] sm:$0xff] }
 0x1ec   :  { %1914 = vrot.lane.b32.xlu1 %v1913_v46, %s2002_s0  ;;  %v2180_v48 = vpop.f32.mrb[6].mxu1  ;;  %1728 = vmatprep.subr.bf16.mxu0 %v1727_v47  ;;  %v1779_v46 = vpack.c.bf16 %v670_v45, %v669_v44 }
 0x1ed   :  { %v2182_v49 = vpop.f32.mrb[7].mxu1  ;;  %1730 = vmatpush3.bf16.msra.mxu0 %v1727_v47  ;;  %v673_v47 = vld [vmem:[#allocation2 + $0xd0] sm:$0xff] }
 0x1ee   :  { %v1938_v50 = vpack.i.bf16 %v2180_v48, %v2182_v49  ;;  %v1731_v51 = vpack.c.bf16 %v2180_v48, %v2182_v49  ;;  %v1900_v48 = vpop.permute.xlu0 %1899  ;;  %v1895_v49 = vpop.permute.xlu1 %1894 }
 0x1ef   :  { %v1897_v60 = vunpack.i.h.bf16 %v1895_v49  ;;  %v1896_v61 = vunpack.i.l.bf16 %v1895_v49  ;;  %v1901_v0 = vunpack.i.l.bf16 %v1900_v48 }
 0x1f0   :  { %1732 = vmatprep.subr.bf16.mxu0 %v1731_v51 }
 0x1f1   :  { %1734 = vmatpush3.bf16.msra.mxu0 %v1731_v51  ;;  %v674_v51 = vld [vmem:[#allocation2 + $0xd8] sm:$0xff]  ;;  %v490_v1 = vsel %vm487_vm1, %v2062_v2, %v1896_v61  ;;  %v818_v61 = vld [vmem:[#allocation2 + $0x130] sm:$0xff] }
 0x1f2   :  { %1768 = vmatprep.subr.bf16.mxu0 %v1767_v31  ;;  %v1787_v52 = vpack.c.bf16 %v674_v51, %v673_v47  ;;  %v675_v51 = vld [vmem:[#allocation2 + $0xe0] sm:$0xff] }
 0x1f4   :  { %1481 = vmatmul.mubr.msk.f32.vlgmr.msra.gmra.mrb[8].mxu0 %vm51_vm0, %v2105_v13  ;;  %v1755_v13 = vpack.c.bf16 %v525_v12, %v524_v9 }
 0x1f5   :  { %1483 = vmatprep.mubr.msk.f32.mxu0 %vm51_vm0, %v2110_v14  ;;  %v526_v14 = vld [vmem:[#allocation2 + $0x60] sm:$0xff]  ;;  %1770 = vmatpush3.bf16.msra.mxu0 %v1767_v31 }
 0x1f6   :  { %1756 = vmatprep.subr.bf16.mxu1 %v1755_v13  ;;  %1772 = vmatprep.subr.bf16.mxu0 %v1771_v37 }
 0x1f7   :  { %1758 = vmatpush3.bf16.msra.mxu1 %v1755_v13 }
 0x1f8   :  { %1484 = vmatmul.mubr.msk.f32.gmra.mrb[10].mxu0 %vm51_vm0, %v2119_v15  ;;  %v527_v15 = vld [vmem:[#allocation2 + $0x68] sm:$0xff] }
 0x1f9   :  { %1486 = vmatprep.mubr.msk.f32.mxu0 %vm51_vm0, %v2124_v16  ;;  %v1759_v16 = vpack.c.bf16 %v527_v15, %v526_v14  ;;  %1774 = vmatpush3.bf16.msra.mxu0 %v1771_v37 }
 0x1fa   :  { %1776 = vmatprep.subr.bf16.mxu0 %v1775_v43 }
 0x1fb   :  { %1760 = vmatprep.subr.bf16.mxu1 %v1759_v16 }
 0x1fc   :  { %1487 = vmatmul.mubr.msk.f32.gmra.mrb[12].mxu0 %vm51_vm0, %v2133_v17  ;;  %1762 = vmatpush3.bf16.msra.mxu1 %v1759_v16  ;;  %v528_v17 = vld [vmem:[#allocation2 + $0x70] sm:$0xff] }
 0x1fd   :  { %1489 = vmatprep.mubr.msk.f32.mxu0 %vm51_vm0, %v2138_v18  ;;  %v529_v18 = vld [vmem:[#allocation2 + $0x78] sm:$0xff]  ;;  %1778 = vmatpush3.bf16.msra.mxu0 %v1775_v43 }
 0x1fe   :  { %1780 = vmatprep.subr.bf16.mxu0 %v1779_v46 }
 0x200   :  { %1490 = vmatmul.mubr.msk.f32.gmra.mrb[14].mxu0 %vm51_vm0, %v2147_v19  ;;  %v1763_v19 = vpack.c.bf16 %v529_v18, %v528_v17  ;;  %v491_v18 = vsel %vm487_vm1, %v2069_v4, %v1897_v60 }
 0x201   :  { %1782 = vmatpush3.bf16.msra.mxu0 %v1779_v46 }
 0x202   :  { %1764 = vmatprep.subr.bf16.mxu1 %v1763_v19 }
 0x203   :  { %1766 = vmatpush3.bf16.msra.mxu1 %v1763_v19  ;;  %v1902_v19 = vunpack.i.h.bf16 %v1900_v48  ;;  %v677_v48 = vld [vmem:[#allocation2 + $0xf0] sm:$0xff] }
 0x205   :  { %v493_v31 = vsel %vm487_vm1, %v2081_v7, %v1902_v19 }
 0x25e   :  { %v1915_v54 = vpop.permute.xlu1 %1914 }
 0x2c7   :  { %v1482_v20 = vpop.f32.mrb[8].mxu0 }
 0x2c8   :  { %v352_v21 = vpop.f32.mrb[9].mxu0 }
 0x2c9   :  { %v1918_v22 = vpack.i.bf16 %v1482_v20, %v352_v21 }
 0x2cb   :  { %1919 = vrot.lane.b32.xlu1 %v1918_v22, %s2003_s2  ;;  %v1485_v23 = vpop.f32.mrb[10].mxu0  ;;  %v1917_v22 = vunpack.i.h.bf16 %v1915_v54 }
 0x2cc   :  { %v362_v24 = vpop.f32.mrb[11].mxu0 }
 0x2cd   :  { %v1923_v25 = vpack.i.bf16 %v1485_v23, %v362_v24  ;;  %v1916_v23 = vunpack.i.l.bf16 %v1915_v54  ;;  %v501_v38 = vsel %vm51_vm0, %v493_v31, %v1917_v22  ;;  %v814_v54 = vld [vmem:[#allocation2 + $0x110] sm:$0xff] }
 0x2cf   :  { %1924 = vrot.lane.b32.xlu1 %v1923_v25, %s2003_s2  ;;  %v1488_v26 = vpop.f32.mrb[12].mxu0 }
 0x2d0   :  { %v372_v30 = vpop.f32.mrb[13].mxu0 }
 0x2d1   :  { %v1933_v36 = vpack.i.bf16 %v1488_v26, %v372_v30  ;;  %v492_v30 = vsel %vm487_vm1, %v2076_v6, %v1901_v0 }
 0x2d2   :  { %v500_v37 = vsel %vm51_vm0, %v492_v30, %v1916_v23 }
 0x2d3   :  { %1929 = vrot.lane.b32.xlu1 %v1928_v34, %s2001_s12  ;;  %1934 = vrot.lane.b32.xlu0 %v1933_v36, %s2003_s2  ;;  %v1491_v40 = vpop.f32.mrb[14].mxu0  ;;  %v1783_v34 = vpack.c.bf16 %v672_v33, %v671_v32 }
 0x2d4   :  { %v382_v41 = vpop.f32.mrb[15].mxu0 }
 0x2d5   :  { %v1943_v42 = vpack.i.bf16 %v1491_v40, %v382_v41  ;;  %1784 = vmatprep.subr.bf16.mxu0 %v1783_v34 }
 0x2d6   :  { %1786 = vmatpush3.bf16.msra.mxu0 %v1783_v34 }
 0x2d7   :  { %1939 = vrot.lane.b32.xlu0 %v1938_v50, %s2002_s0  ;;  %1944 = vrot.lane.b32.xlu1 %v1943_v42, %s2003_s2  ;;  %v1905_v50 = vpop.permute.xlu0 %1904 }
 0x2d8   :  { %1788 = vmatprep.subr.bf16.mxu0 %v1787_v52  ;;  %v1907_v57 = vunpack.i.h.bf16 %v1905_v50  ;;  %v1906_v58 = vunpack.i.l.bf16 %v1905_v50  ;;  %v813_v50 = vld [vmem:[#allocation2 + $0x108] sm:$0xff] }
 0x2da   :  { %1790 = vmatpush3.bf16.msra.mxu0 %v1787_v52  ;;  %v497_v9 = vsel %vm51_vm0, %v489_v63, %v1907_v57  ;;  %v496_v14 = vsel %vm51_vm0, %v488_v8, %v1906_v58  ;;  %v676_v52 = vld [vmem:[#allocation2 + $0xe8] sm:$0xff]  ;;  %v1803_v57 = vpack.c.bf16 %v815_v56, %v814_v54  ;;  %v816_v58 = vld [vmem:[#allocation2 + $0x120] sm:$0xff] }
 0x2db   :  { %v1910_v59 = vpop.permute.xlu0 %1909  ;;  %v1791_v53 = vpack.c.bf16 %v676_v52, %v675_v51  ;;  %v826_v51 = vld [vmem:[#allocation2 + $0x170] sm:$0xff]  ;;  %v827_v52 = vld [vmem:[#allocation2 + $0x178] sm:$0xff]  ;;  %v966_v56 = vld [vmem:[#allocation2 + $0x1a8] sm:$0xff] }
 0x2dc   :  { %v1912_v12 = vunpack.i.h.bf16 %v1910_v59  ;;  %v1911_v13 = vunpack.i.l.bf16 %v1910_v59  ;;  %v817_v59 = vld [vmem:[#allocation2 + $0x128] sm:$0xff] }
 0x2dd   :  { %1792 = vmatprep.subr.bf16.mxu0 %v1791_v53  ;;  %v1807_v60 = vpack.c.bf16 %v817_v59, %v816_v58  ;;  %v967_v58 = vld [vmem:[#allocation2 + $0x1b0] sm:$0xff]  ;;  %v968_v59 = vld [vmem:[#allocation2 + $0x1b8] sm:$0xff] }
 0x2de   :  { %v498_v24 = vsel %vm51_vm0, %v490_v1, %v1911_v13  ;;  %v499_v25 = vsel %vm51_vm0, %v491_v18, %v1912_v12  ;;  %1794 = vmatpush3.bf16.msra.mxu0 %v1791_v53  ;;  %v823_v12 = vld [vmem:[#allocation2 + $0x158] sm:$0xff]  ;;  %v1827_v53 = vpack.c.bf16 %v827_v52, %v826_v51  ;;  %v1110_v51 = vld [vmem:[%s2283_s4] sm:$0xff]  ;;  %v1111_v52 = vld [vmem:[%s2283_s4 + $0x8] sm:$0xff]  ;;  %s2006_s4 = smov [#allocation5]  }
 0x2df   :  { %s1217_s18 = sshll.u32 %s2006_s4, 4  ;;  %s1218_s18 = int_to_ptr.vmem [resolvable:$true] %s1217_s18 }
 0x2e0   :  { %s1972_s19 = scalar_lea.vmem %s1218_s18, 128  ;;  %p1977_p9 = scmp.lt.s32.totalorder %s1218_s18, %s1218_s18 }
 0x2e1   :  { %p1973_p8 = scmp.ne.s32.totalorder %s1218_s18, %s1972_s19  ;;  %p1978_p10 = scmp.lt.s32.totalorder %s1972_s19, %s1972_s19 }
 0x2e3   :  { %p1979_p11 = por %p1978_p10, %p1977_p9 }
 0x2e5   :  { %p1980_p12 = pnand %p1979_p11, %p1973_p8 }
 0x33d   :  { %v1920_v62 = vpop.permute.xlu1 %1919 }
 0x33e   :  { %v1922_v3 = vunpack.i.h.bf16 %v1920_v62  ;;  %v1921_v5 = vunpack.i.l.bf16 %v1920_v62  ;;  %v819_v62 = vld [vmem:[#allocation2 + $0x138] sm:$0xff] }
 0x33f   :  { %v1811_v63 = vpack.c.bf16 %v819_v62, %v818_v61  ;;  %v969_v61 = vld [vmem:[#allocation2 + $0x1c0] sm:$0xff]  ;;  %v970_v62 = vld [vmem:[#allocation2 + $0x1c8] sm:$0xff] }
 0x340   :  { %v505_v15 = vsel %vm504_vm2, %v496_v14, %v1921_v5  ;;  %v506_v16 = vsel %vm504_vm2, %v497_v9, %v1922_v3  ;;  %v820_v3 = vld [vmem:[#allocation2 + $0x140] sm:$0xff]  ;;  %v821_v5 = vld [vmem:[#allocation2 + $0x148] sm:$0xff]  ;;  %v822_v9 = vld [vmem:[#allocation2 + $0x150] sm:$0xff]  ;;  %v530_v14 = vlaneseq }
 0x341   :  { %1524 = vmatprep.mubr.f32.mxu1 %v505_v15  ;;  %v1925_v17 = vpop.permute.xlu1 %1924  ;;  %v1815_v8 = vpack.c.bf16 %v821_v5, %v820_v3  ;;  %v1819_v13 = vpack.c.bf16 %v823_v12, %v822_v9  ;;  %v971_v3 = vld [vmem:[#allocation2 + $0x1d0] sm:$0xff]  ;;  %v972_v5 = vld [vmem:[#allocation2 + $0x1d8] sm:$0xff] }
 0x342   :  { %v1927_v20 = vunpack.i.h.bf16 %v1925_v17  ;;  %v1926_v21 = vunpack.i.l.bf16 %v1925_v17  ;;  %1525 = vmatmul.mubr.f32.vlgmr.msra.gmra.mrb[8].mxu1 %v506_v16  ;;  %v2243_v15 = vshrl.u32 %v530_v14, 7  ;;  %v2249_v17 = vld [vmem:[%s2282_s3] sm:$0xf] }
 0x344   :  { %v507_v26 = vsel %vm504_vm2, %v498_v24, %v1926_v21  ;;  %v508_v27 = vsel %vm504_vm2, %v499_v25, %v1927_v20  ;;  %v532_v16 = vsub.s32 0, %v2243_v15  ;;  %v681_v9 = vsub.s32 1, %v2243_v15 }
 0x345   :  { %v1930_v28 = vpop.permute.xlu1 %1929  ;;  %1527 = vmatprep.mubr.f32.mxu1 %v507_v26  ;;  %v1935_v2 = vpop.permute.xlu0 %1934 }
 0x346   :  { %v1937_v29 = vunpack.i.h.bf16 %v1935_v2  ;;  %v1936_v4 = vunpack.i.l.bf16 %v1935_v2  ;;  %1528 = vmatmul.mubr.f32.gmra.mrb[10].mxu1 %v508_v27  ;;  %v1932_v35 = vunpack.i.h.bf16 %v1930_v28  ;;  %v1931_v36 = vunpack.i.l.bf16 %v1930_v28 }
 0x347   :  { %v533_v1 = vrot.slane %v2249_v17, %v532_v16  ;;  %v682_v12 = vrot.slane %v2249_v17, %v681_v9 }
 0x348   :  { %v509_v39 = vsel %vm504_vm2, %v500_v37, %v1936_v4  ;;  %v510_v40 = vsel %vm504_vm2, %v501_v38, %v1937_v29  ;;  %v494_v7 = vsel %vm487_vm1, %v2093_v10, %v1931_v36  ;;  %v495_v46 = vsel %vm487_vm1, %v2098_v11, %v1932_v35  ;;  %v678_v10 = vld [vmem:[#allocation2 + $0xf8] sm:$0xff]  ;;  %v812_v11 = vld [vmem:[#allocation2 + $0x100] sm:$0xff] }
 0x349   :  { %v1940_v41 = vpop.permute.xlu0 %1939  ;;  %1530 = vmatprep.mubr.f32.mxu1 %v509_v39  ;;  %v1945_v42 = vpop.permute.xlu1 %1944  ;;  %v1795_v49 = vpack.c.bf16 %v678_v10, %v677_v48  ;;  %v1799_v55 = vpack.c.bf16 %v813_v50, %v812_v11  ;;  %v961_v48 = vld [vmem:[#allocation2 + $0x180] sm:$0xff]  ;;  %v962_v10 = vld [vmem:[#allocation2 + $0x188] sm:$0xff]  ;;  %v964_v50 = vld [vmem:[#allocation2 + $0x198] sm:$0xff] }
 0x34a   :  { %v1942_v43 = vunpack.i.h.bf16 %v1940_v41  ;;  %v1941_v44 = vunpack.i.l.bf16 %v1940_v41  ;;  %v1947_v45 = vunpack.i.h.bf16 %v1945_v42  ;;  %v1946_v6 = vunpack.i.l.bf16 %v1945_v42  ;;  %1531 = vmatmul.mubr.f32.gmra.mrb[12].mxu1 %v510_v40 }
 0x34b   :  { %1796 = vmatprep.subr.bf16.mxu0 %v1795_v49  ;;  %1800 = vmatprep.subr.bf16.mxu1 %v1799_v55  ;;  %v1831_v11 = vpack.c.bf16 %v962_v10, %v961_v48  ;;  %v830_v48 = vsub.s32 2, %v2243_v15 }
 0x34c   :  { %v502_v32 = vsel %vm51_vm0, %v494_v7, %v1941_v44  ;;  %v503_v33 = vsel %vm51_vm0, %v495_v46, %v1942_v43  ;;  %1798 = vmatpush3.bf16.msra.mxu0 %v1795_v49  ;;  %1802 = vmatpush3.bf16.msra.mxu1 %v1799_v55  ;;  %v963_v49 = vld [vmem:[#allocation2 + $0x190] sm:$0xff]  ;;  %v965_v55 = vld [vmem:[#allocation2 + $0x1a0] sm:$0xff] }
 0x34d   :  { %v511_v34 = vsel %vm504_vm2, %v502_v32, %v1946_v6  ;;  %v512_v47 = vsel %vm504_vm2, %v503_v33, %v1947_v45  ;;  %1804 = vmatprep.subr.bf16.mxu1 %v1803_v57  ;;  %v824_v33 = vld [vmem:[#allocation2 + $0x160] sm:$0xff]  ;;  %v1835_v54 = vpack.c.bf16 %v964_v50, %v963_v49  ;;  %1832 = vmatprep.subr.bf16.mxu0 %v1831_v11 }
 0x34e   :  { %1533 = vmatprep.mubr.f32.mxu1 %v511_v34  ;;  %v825_v34 = vld [vmem:[#allocation2 + $0x168] sm:$0xff]  ;;  %v831_v10 = vrot.slane %v2249_v17, %v830_v48 }
 0x34f   :  { %1534 = vmatmul.mubr.f32.gmra.mrb[14].mxu1 %v512_v47  ;;  %v1823_v47 = vpack.c.bf16 %v825_v34, %v824_v33  ;;  %v975_v33 = vld [vmem:[#allocation2 + $0x1f0] sm:$0xff]  ;;  %v976_v34 = vld [vmem:[#allocation2 + $0x1f8] sm:$0xff] }
 0x350   :  { %1806 = vmatpush3.bf16.msra.mxu1 %v1803_v57  ;;  %v1839_v57 = vpack.c.bf16 %v966_v56, %v965_v55 }
 0x351   :  { %1808 = vmatprep.subr.bf16.mxu1 %v1807_v60 }
 0x354   :  { %1810 = vmatpush3.bf16.msra.mxu1 %v1807_v60  ;;  %v1843_v60 = vpack.c.bf16 %v968_v59, %v967_v58 }
 0x355   :  { %1812 = vmatprep.subr.bf16.mxu1 %v1811_v63 }
 0x358   :  { %1814 = vmatpush3.bf16.msra.mxu1 %v1811_v63  ;;  %v1847_v63 = vpack.c.bf16 %v970_v62, %v969_v61 }
 0x359   :  { %1816 = vmatprep.subr.bf16.mxu1 %v1815_v8 }
 0x35c   :  { %1818 = vmatpush3.bf16.msra.mxu1 %v1815_v8  ;;  %v1851_v8 = vpack.c.bf16 %v972_v5, %v971_v3 }
 0x35d   :  { %1820 = vmatprep.subr.bf16.mxu1 %v1819_v13 }
 0x360   :  { %1822 = vmatpush3.bf16.msra.mxu1 %v1819_v13 }
 0x361   :  { %1824 = vmatprep.subr.bf16.mxu1 %v1823_v47 }
 0x364   :  { %1826 = vmatpush3.bf16.msra.mxu1 %v1823_v47  ;;  %v1859_v47 = vpack.c.bf16 %v976_v34, %v975_v33 }
 0x365   :  { %1828 = vmatprep.subr.bf16.mxu1 %v1827_v53 }
 0x368   :  { %1830 = vmatpush3.bf16.msra.mxu1 %v1827_v53  ;;  %v2004_v53 = vmov 0  }
 0x369   :  { %1948 = vset.pattern.permute.xlu0 %v2004_v53  ;;  %1949 = vset.pattern.permute.xlu1 %v2004_v53 }
 0x36a   :  { %1115 = vperm.xlu0 %1948, %v1110_v51   ;;  %1118 = vperm.xlu1 %1949, %v1111_v52  }
 0x415   :  { %v1526_v18 = vpop.f32.mrb[8].mxu1 }
 0x416   :  { %v606_v19 = vadd.f32 %v1526_v18, %v533_v1  ;;  %v600_v0 = vpop.f32.mrb[9].mxu1 }
 0x417   :  { %v601_v20 = vadd.f32 %v600_v0, %v533_v1 }
 0x418   :  { %v648_v21 = vmul.f32 0.4, %v606_v19  ;;  %vm640_vm3 = vcmp.gt.f32.partialorder %v606_v19, 0.0 }
 0x419   :  { %v647_v22 = vmul.f32 0.4, %v601_v20  ;;  %v1529_v23 = vpop.f32.mrb[10].mxu1  ;;  %vm639_vm4 = vcmp.gt.f32.partialorder %v601_v20, 0.0 }
 0x41a   :  { %v616_v24 = vadd.f32 %v1529_v23, %v533_v1  ;;  %v610_v25 = vpop.f32.mrb[11].mxu1  ;;  %v656_v28 = vsel %vm640_vm3, %v606_v19, %v648_v21 }
 0x41b   :  { %v611_v26 = vadd.f32 %v610_v25, %v533_v1  ;;  %v655_v27 = vsel %vm639_vm4, %v601_v20, %v647_v22 }
 0x41c   :  { %v650_v2 = vmul.f32 0.4, %v616_v24  ;;  %1568 = vmatprep.mubr.f32.mxu0 %v655_v27  ;;  %vm642_vm6 = vcmp.gt.f32.partialorder %v616_v24, 0.0 }
 0x41d   :  { %v649_v29 = vmul.f32 0.4, %v611_v26  ;;  %v1532_v4 = vpop.f32.mrb[12].mxu1  ;;  %1569 = vmatmul.mubr.f32.vlgmr.msra.gmra.mrb[16].mxu0 %v656_v28  ;;  %vm641_vm5 = vcmp.gt.f32.partialorder %v611_v26, 0.0 }
 0x41e   :  { %v626_v30 = vadd.f32 %v1532_v4, %v533_v1  ;;  %v620_v31 = vpop.f32.mrb[13].mxu1  ;;  %v658_v38 = vsel %vm642_vm6, %v616_v24, %v650_v2  ;;  %1834 = vmatpush3.bf16.msra.mxu0 %v1831_v11 }
 0x41f   :  { %v621_v35 = vadd.f32 %v620_v31, %v533_v1  ;;  %v657_v36 = vsel %vm641_vm5, %v611_v26, %v649_v29  ;;  %1836 = vmatprep.subr.bf16.mxu0 %v1835_v54 }
 0x420   :  { %v652_v37 = vmul.f32 0.4, %v626_v30  ;;  %1571 = vmatprep.mubr.f32.mxu0 %v657_v36  ;;  %vm644_vm8 = vcmp.gt.f32.partialorder %v626_v30, 0.0 }
 0x421   :  { %v651_v39 = vmul.f32 0.4, %v621_v35  ;;  %1572 = vmatmul.mubr.f32.gmra.mrb[18].mxu0 %v658_v38  ;;  %vm643_vm7 = vcmp.gt.f32.partialorder %v621_v35, 0.0 }
 0x422   :  { %v1535_v40 = vpop.f32.mrb[14].mxu1  ;;  %v660_v45 = vsel %vm644_vm8, %v626_v30, %v652_v37  ;;  %1838 = vmatpush3.bf16.msra.mxu0 %v1835_v54 }
 0x423   :  { %v636_v41 = vadd.f32 %v1535_v40, %v533_v1  ;;  %v630_v42 = vpop.f32.mrb[15].mxu1  ;;  %v659_v43 = vsel %vm643_vm7, %v621_v35, %v651_v39  ;;  %1840 = vmatprep.subr.bf16.mxu0 %v1839_v57 }
 0x424   :  { %v631_v44 = vadd.f32 %v630_v42, %v533_v1  ;;  %1574 = vmatprep.mubr.f32.mxu0 %v659_v43 }
 0x425   :  { %v654_v6 = vmul.f32 0.4, %v636_v41  ;;  %1575 = vmatmul.mubr.f32.gmra.mrb[20].mxu0 %v660_v45  ;;  %vm646_vm10 = vcmp.gt.f32.partialorder %v636_v41, 0.0 }
 0x426   :  { %v653_v7 = vmul.f32 0.4, %v631_v44  ;;  %vm645_vm9 = vcmp.gt.f32.partialorder %v631_v44, 0.0  ;;  %1842 = vmatpush3.bf16.msra.mxu0 %v1839_v57 }
 0x427   :  { %v662_v32 = vsel %vm646_vm10, %v636_v41, %v654_v6  ;;  %1844 = vmatprep.subr.bf16.mxu0 %v1843_v60 }
 0x428   :  { %v661_v46 = vsel %vm645_vm9, %v631_v44, %v653_v7  ;;  %v973_v7 = vld [vmem:[#allocation2 + $0x1e0] sm:$0xff] }
 0x429   :  { %1577 = vmatprep.mubr.f32.mxu0 %v661_v46  ;;  %v974_v46 = vld [vmem:[#allocation2 + $0x1e8] sm:$0xff] }
 0x42a   :  { %1578 = vmatmul.mubr.f32.gmra.mrb[22].mxu0 %v662_v32  ;;  %v1855_v32 = vpack.c.bf16 %v974_v46, %v973_v7 }
 0x42b   :  { %1846 = vmatpush3.bf16.msra.mxu0 %v1843_v60 }
 0x42c   :  { %1848 = vmatprep.subr.bf16.mxu0 %v1847_v63 }
 0x42f   :  { %1850 = vmatpush3.bf16.msra.mxu0 %v1847_v63 }
 0x430   :  { %1852 = vmatprep.subr.bf16.mxu0 %v1851_v8 }
 0x433   :  { %1854 = vmatpush3.bf16.msra.mxu0 %v1851_v8 }
 0x434   :  { %1856 = vmatprep.subr.bf16.mxu0 %v1855_v32 }
 0x437   :  { %1858 = vmatpush3.bf16.msra.mxu0 %v1855_v32 }
 0x438   :  { %1860 = vmatprep.subr.bf16.mxu0 %v1859_v47 }
 0x43b   :  { %1862 = vmatpush3.bf16.msra.mxu0 %v1859_v47 }
 0x4f0   :  { %v1570_v13 = vpop.f32.mrb[16].mxu0 }
 0x4f1   :  { %v755_v16 = vadd.f32 %v1570_v13, %v682_v12  ;;  %v749_v1 = vpop.f32.mrb[17].mxu0 }
 0x4f2   :  { %v750_v18 = vadd.f32 %v749_v1, %v682_v12 }
 0x4f3   :  { %v797_v19 = vmul.f32 0.4, %v755_v16  ;;  %vm789_vm11 = vcmp.gt.f32.partialorder %v755_v16, 0.0 }
 0x4f4   :  { %v796_v0 = vmul.f32 0.4, %v750_v18  ;;  %v1573_v20 = vpop.f32.mrb[18].mxu0  ;;  %vm788_vm12 = vcmp.gt.f32.partialorder %v750_v18, 0.0 }
 0x4f5   :  { %v765_v21 = vadd.f32 %v1573_v20, %v682_v12  ;;  %v759_v22 = vpop.f32.mrb[19].mxu0  ;;  %v805_v25 = vsel %vm789_vm11, %v755_v16, %v797_v19 }
 0x4f6   :  { %v760_v23 = vadd.f32 %v759_v22, %v682_v12  ;;  %v804_v24 = vsel %vm788_vm12, %v750_v18, %v796_v0 }
 0x4f7   :  { %v799_v26 = vmul.f32 0.4, %v765_v21  ;;  %1612 = vmatprep.mubr.f32.mxu1 %v804_v24  ;;  %vm791_vm14 = vcmp.gt.f32.partialorder %v765_v21, 0.0 }
 0x4f8   :  { %v798_v27 = vmul.f32 0.4, %v760_v23  ;;  %v1576_v28 = vpop.f32.mrb[20].mxu0  ;;  %1613 = vmatmul.mubr.f32.vlgmr.msra.gmra.mrb[16].mxu1 %v805_v25  ;;  %vm790_vm13 = vcmp.gt.f32.partialorder %v760_v23, 0.0 }
 0x4f9   :  { %v775_v2 = vadd.f32 %v1576_v28, %v682_v12  ;;  %v769_v29 = vpop.f32.mrb[21].mxu0  ;;  %v807_v35 = vsel %vm791_vm14, %v765_v21, %v799_v26  ;;  %v1113_v28 = vand.u32 127, %v530_v14 }
 0x4fa   :  { %v770_v4 = vadd.f32 %v769_v29, %v682_v12  ;;  %v806_v30 = vsel %vm790_vm13, %v760_v23, %v798_v27  ;;  %v2005_v29 = vmov 0.0  }
 0x4fb   :  { %v801_v31 = vmul.f32 0.4, %v775_v2  ;;  %1615 = vmatprep.mubr.f32.mxu1 %v806_v30  ;;  %vm793_vm1 = vcmp.gt.f32.partialorder %v775_v2, 0.0  ;;  %v1119_v30 = vpop.permute.xlu1 %1118 }
 0x4fc   :  { %v800_v36 = vmul.f32 0.4, %v770_v4  ;;  %1616 = vmatmul.mubr.f32.gmra.mrb[18].mxu1 %v807_v35  ;;  %vm792_vm15 = vcmp.gt.f32.partialorder %v770_v4, 0.0  ;;  %vm1121_vm13 = vcmp.eq.s32.totalorder %v1113_v28, %v1119_v30  ;;  %v979_v35 = vsub.s32 3, %v2243_v15 }
 0x4fd   :  { %v1579_v37 = vpop.f32.mrb[22].mxu0  ;;  %v809_v42 = vsel %vm793_vm1, %v775_v2, %v801_v31  ;;  %v1116_v2 = vpop.permute.xlu0 %1115  ;;  %v1251_v31 = vsel %vm1121_vm13, 1.0, %v2005_v29 }
 0x4fe   :  { %v785_v38 = vadd.f32 %v1579_v37, %v682_v12  ;;  %v779_v39 = vpop.f32.mrb[23].mxu0  ;;  %v808_v40 = vsel %vm792_vm15, %v770_v4, %v800_v36  ;;  %vm1120_vm12 = vcmp.eq.s32.totalorder %v1113_v28, %v1116_v2  ;;  %v980_v36 = vrot.slane %v2249_v17, %v979_v35 }
 0x4ff   :  { %v780_v41 = vadd.f32 %v779_v39, %v682_v12  ;;  %1618 = vmatprep.mubr.f32.mxu1 %v808_v40  ;;  %v1250_v4 = vsel %vm1120_vm12, 1.0, %v2005_v29 }
 0x500   :  { %v803_v43 = vmul.f32 0.4, %v785_v38  ;;  %1619 = vmatmul.mubr.f32.gmra.mrb[20].mxu1 %v809_v42  ;;  %vm795_vm3 = vcmp.gt.f32.partialorder %v785_v38, 0.0 }
 0x501   :  { %v802_v44 = vmul.f32 0.4, %v780_v41  ;;  %vm794_vm2 = vcmp.gt.f32.partialorder %v780_v41, 0.0 }
 0x502   :  { %v811_v6 = vsel %vm795_vm3, %v785_v38, %v803_v43 }
 0x503   :  { %v810_v45 = vsel %vm794_vm2, %v780_v41, %v802_v44 }
 0x504   :  { %1621 = vmatprep.mubr.f32.mxu1 %v810_v45 }
 0x505   :  { %1622 = vmatmul.mubr.f32.gmra.mrb[22].mxu1 %v811_v6 }
 0x506   :  { %1684 = vmatprep.mubr.msk.f32.mxu1 %vm51_vm0, %v1250_v4 }
 0x5cb   :  { %v1614_v49 = vpop.f32.mrb[16].mxu1 }
 0x5cc   :  { %v904_v11 = vadd.f32 %v1614_v49, %v831_v10  ;;  %v898_v50 = vpop.f32.mrb[17].mxu1 }
 0x5cd   :  { %v899_v54 = vadd.f32 %v898_v50, %v831_v10 }
 0x5ce   :  { %v946_v55 = vmul.f32 0.4, %v904_v11  ;;  %vm938_vm4 = vcmp.gt.f32.partialorder %v904_v11, 0.0 }
 0x5cf   :  { %v945_v56 = vmul.f32 0.4, %v899_v54  ;;  %v1617_v57 = vpop.f32.mrb[18].mxu1  ;;  %vm937_vm5 = vcmp.gt.f32.partialorder %v899_v54, 0.0 }
 0x5d0   :  { %v914_v58 = vadd.f32 %v1617_v57, %v831_v10  ;;  %v908_v59 = vpop.f32.mrb[19].mxu1  ;;  %v954_v62 = vsel %vm938_vm4, %v904_v11, %v946_v55 }
 0x5d1   :  { %v909_v60 = vadd.f32 %v908_v59, %v831_v10  ;;  %v953_v61 = vsel %vm937_vm5, %v899_v54, %v945_v56 }
 0x5d2   :  { %v948_v63 = vmul.f32 0.4, %v914_v58  ;;  %1656 = vmatprep.mubr.f32.mxu0 %v953_v61  ;;  %vm940_vm7 = vcmp.gt.f32.partialorder %v914_v58, 0.0 }
 0x5d3   :  { %v947_v3 = vmul.f32 0.4, %v909_v60  ;;  %v1620_v5 = vpop.f32.mrb[20].mxu1  ;;  %1657 = vmatmul.mubr.f32.vlgmr.msra.gmra.mrb[24].mxu0 %v954_v62  ;;  %vm939_vm6 = vcmp.gt.f32.partialorder %v909_v60, 0.0 }
 0x5d4   :  { %v924_v8 = vadd.f32 %v1620_v5, %v831_v10  ;;  %v918_v9 = vpop.f32.mrb[21].mxu1  ;;  %v956_v1 = vsel %vm940_vm7, %v914_v58, %v948_v63 }
 0x5d5   :  { %v919_v12 = vadd.f32 %v918_v9, %v831_v10  ;;  %v955_v13 = vsel %vm939_vm6, %v909_v60, %v947_v3 }
 0x5d6   :  { %v950_v16 = vmul.f32 0.4, %v924_v8  ;;  %1659 = vmatprep.mubr.f32.mxu0 %v955_v13  ;;  %vm942_vm9 = vcmp.gt.f32.partialorder %v924_v8, 0.0 }
 0x5d7   :  { %v949_v18 = vmul.f32 0.4, %v919_v12  ;;  %1660 = vmatmul.mubr.f32.gmra.mrb[26].mxu0 %v956_v1  ;;  %vm941_vm8 = vcmp.gt.f32.partialorder %v919_v12, 0.0 }
 0x5d8   :  { %v1623_v19 = vpop.f32.mrb[22].mxu1  ;;  %v958_v23 = vsel %vm942_vm9, %v924_v8, %v950_v16 }
 0x5d9   :  { %v934_v0 = vadd.f32 %v1623_v19, %v831_v10  ;;  %v928_v20 = vpop.f32.mrb[23].mxu1  ;;  %v957_v21 = vsel %vm941_vm8, %v919_v12, %v949_v18 }
 0x5da   :  { %v929_v22 = vadd.f32 %v928_v20, %v831_v10  ;;  %1662 = vmatprep.mubr.f32.mxu0 %v957_v21 }
 0x5db   :  { %v952_v24 = vmul.f32 0.4, %v934_v0  ;;  %1663 = vmatmul.mubr.f32.gmra.mrb[28].mxu0 %v958_v23  ;;  %vm944_vm11 = vcmp.gt.f32.partialorder %v934_v0, 0.0 }
 0x5dc   :  { %v951_v25 = vmul.f32 0.4, %v929_v22  ;;  %vm943_vm10 = vcmp.gt.f32.partialorder %v929_v22, 0.0 }
 0x5dd   :  { %v960_v27 = vsel %vm944_vm11, %v934_v0, %v952_v24 }
 0x5de   :  { %v959_v26 = vsel %vm943_vm10, %v929_v22, %v951_v25 }
 0x5df   :  { %1665 = vmatprep.mubr.f32.mxu0 %v959_v26 }
 0x5e0   :  { %1666 = vmatmul.mubr.f32.gmra.mrb[30].mxu0 %v960_v27 }
 0x6a6   :  { %v1658_v37 = vpop.f32.mrb[24].mxu0 }
 0x6a7   :  { %v1053_v38 = vadd.f32 %v1658_v37, %v980_v36  ;;  %v1047_v39 = vpop.f32.mrb[25].mxu0 }
 0x6a8   :  { %v1048_v40 = vadd.f32 %v1047_v39, %v980_v36 }
 0x6a9   :  { %vm1087_vm14 = vcmp.gt.f32.partialorder %v1053_v38, 0.0  ;;  %v1095_v41 = vmul.f32 0.4, %v1053_v38 }
 0x6aa   :  { %vm1086_vm15 = vcmp.gt.f32.partialorder %v1048_v40, 0.0  ;;  %v1094_v14 = vmul.f32 0.4, %v1048_v40  ;;  %v1661_v42 = vpop.f32.mrb[26].mxu0 }
 0x6ab   :  { %v1063_v43 = vadd.f32 %v1661_v42, %v980_v36  ;;  %v1057_v44 = vpop.f32.mrb[27].mxu0  ;;  %v1103_v45 = vsel %vm1087_vm14, %v1053_v38, %v1095_v41 }
 0x6ac   :  { %v1058_v6 = vadd.f32 %v1057_v44, %v980_v36  ;;  %v1102_v7 = vsel %vm1086_vm15, %v1048_v40, %v1094_v14 }
 0x6ad   :  { %vm1089_vm1 = vcmp.gt.f32.partialorder %v1063_v43, 0.0  ;;  %v1097_v46 = vmul.f32 0.4, %v1063_v43  ;;  %v1863_v32 = vpack.c.bf16 %v1103_v45, %v1102_v7 }
 0x6ae   :  { %vm1088_vm2 = vcmp.gt.f32.partialorder %v1058_v6, 0.0  ;;  %v1096_v15 = vmul.f32 0.4, %v1058_v6  ;;  %v1664_v17 = vpop.f32.mrb[28].mxu0 }
 0x6af   :  { %v1073_v33 = vadd.f32 %v1664_v17, %v980_v36  ;;  %v1067_v34 = vpop.f32.mrb[29].mxu0  ;;  %1864 = vmatprep.subr.bf16.mxu1 %v1863_v32  ;;  %v1105_v47 = vsel %vm1089_vm1, %v1063_v43, %v1097_v46 }
 0x6b0   :  { %v1068_v51 = vadd.f32 %v1067_v34, %v980_v36  ;;  %1866 = vmatpush3.bf16.msra.mxu1 %v1863_v32  ;;  %v1104_v52 = vsel %vm1088_vm2, %v1058_v6, %v1096_v15 }
 0x6b1   :  { %vm1091_vm3 = vcmp.gt.f32.partialorder %v1073_v33, 0.0  ;;  %v1099_v53 = vmul.f32 0.4, %v1073_v33  ;;  %v1867_v48 = vpack.c.bf16 %v1105_v47, %v1104_v52 }
 0x6b2   :  { %vm1090_vm4 = vcmp.gt.f32.partialorder %v1068_v51, 0.0  ;;  %v1098_v10 = vmul.f32 0.4, %v1068_v51 }
 0x6b3   :  { %v1667_v49 = vpop.f32.mrb[30].mxu0  ;;  %1868 = vmatprep.subr.bf16.mxu1 %v1867_v48  ;;  %v1107_v11 = vsel %vm1091_vm3, %v1073_v33, %v1099_v53 }
 0x6b4   :  { %v1083_v50 = vadd.f32 %v1667_v49, %v980_v36  ;;  %v1077_v54 = vpop.f32.mrb[31].mxu0  ;;  %1870 = vmatpush3.bf16.msra.mxu1 %v1867_v48  ;;  %v1106_v55 = vsel %vm1090_vm4, %v1068_v51, %v1098_v10 }
 0x6b5   :  { %v1078_v56 = vadd.f32 %v1077_v54, %v980_v36  ;;  %v1871_v57 = vpack.c.bf16 %v1107_v11, %v1106_v55 }
 0x6b6   :  { %vm1093_vm5 = vcmp.gt.f32.partialorder %v1083_v50, 0.0  ;;  %v1101_v58 = vmul.f32 0.4, %v1083_v50 }
 0x6b7   :  { %vm1092_vm6 = vcmp.gt.f32.partialorder %v1078_v56, 0.0  ;;  %v1100_v59 = vmul.f32 0.4, %v1078_v56  ;;  %1872 = vmatprep.subr.bf16.mxu1 %v1871_v57 }
 0x6b8   :  { %1874 = vmatpush3.bf16.msra.mxu1 %v1871_v57  ;;  %v1109_v60 = vsel %vm1093_vm5, %v1083_v50, %v1101_v58 }
 0x6b9   :  { %v1108_v61 = vsel %vm1092_vm6, %v1078_v56, %v1100_v59 }
 0x6ba   :  { %v1875_v62 = vpack.c.bf16 %v1109_v60, %v1108_v61 }
 0x6bc   :  { %1876 = vmatprep.subr.bf16.mxu1 %v1875_v62 }
 0x6bd   :  { %1878 = vmatpush3.bf16.msra.mxu1 %v1875_v62 }
 0x6c0   :  { %1685 = vmatmul.mubr.msk.f32.vlgmr.msra.gmra.mrb[24].mxu1 %vm51_vm0, %v1251_v31 }
 0x793   :  { %v1686_v63 = vpop.f32.mrb[24].mxu1 }
 0x794   :  { %v1198_v3 = vpop.f32.mrb[25].mxu1 }
 0x795   :  { %v1207_v5 = vmul.f32 %v1686_v63, %v1198_v3 }
 0x797   :  { %1208 = vadd.xlane.f32.xlu1 %v1207_v5 }
 0x824   :  { %v1209_v8 = vpop.xlane.xlu1 %1208 }
 0x825   :  { %1210 = vst [vmem:[#allocation5] sm:$0xff] %v1209_v8 }
 0x826   :  { %1983 = shalt.err (!%p1980_p12)
}
 0x827   :  { %s1984_s22 = scalar_lea.hbm %s2284_s5, 128 }
 0x828   :  { %p1985_p13 = scmp.ne.s32.totalorder %s2284_s5, %s1984_s22  ;;  %p1988_p0 = scmp.lt.u32.totalorder %s1984_s22, %s2284_s5 }
 0x82a   :  { %p1990_p1 = pnand %p1988_p0, %p1985_p13 }
 0x82c   :  { %1993 = shalt.err (!%p1990_p1)
}
 0x82d   :  { %1220 = dma.vmem_to_hbm [thread:$0]  %s1218_s18, 128, %s2284_s5, [#allocation4]  }
 0x82e   :  { %1996 = dma.done.wait [#allocation4], 128  }
 0x82f   :  { %1997 = vsyncadd [#allocation4], 4294967168 }
 0x830   :  { %1224 = vsyncpa [#allocation3], 1 }
 0x831   :  { %1225 = vsyncpa [#allocation4], 1 }

</bundles_post_ra>
